<compile_context>
chip_gen: v5e
topology: v5e:2x2
jax: 0.10.0
libtpu: 0.0.40
codegen_flags: <defaults>
</compile_context>

<pallas_src>
import functools

import jax
import jax.numpy as jnp
from jax.experimental import pallas as pl
from jax.experimental.pallas import tpu as pltpu


def _round_up(n, m):
    return ((n + m - 1) // m) * m


def _choose_row_tile(R, tr_max=256):
    """Largest row tile (multiple of 8) whose padding waste stays within ~25%."""
    budget = max(_round_up(R, 8) * 5 // 4, 8)
    for tr in (256, 128, 64, 32, 16, 8):
        if tr <= tr_max and _round_up(R, tr) <= budget:
            return tr, _round_up(R, tr)
    return 8, _round_up(R, 8)


# ---------------- fused 2-layer MLP kernel (Linear -> ReLU -> Linear) ----------------

def _mlp2_kernel(x_ref, w1_ref, b1_ref, w2_ref, b2_ref, o_ref):
    h = jnp.dot(x_ref[...], w1_ref[...], preferred_element_type=jnp.float32)
    h = jnp.maximum(h + b1_ref[...], 0.0)
    o_ref[...] = (jnp.dot(h, w2_ref[...], preferred_element_type=jnp.float32)
                  + b2_ref[...])


def mlp2(x, w1, b1, w2, b2):
    """[R, Din] -> Linear -> ReLU -> Linear -> [R, Dout]; hidden + output widths padded to 128."""
    R, Din = x.shape
    Hd, Dout = w1.shape[1], w2.shape[1]
    Hdp = _round_up(Hd, 128)
    Cp = _round_up(Dout, 128)
    if Hdp != Hd:
        w1 = jnp.pad(w1, ((0, 0), (0, Hdp - Hd)))
        b1 = jnp.pad(b1, ((0, 0), (0, Hdp - Hd)))
        w2 = jnp.pad(w2, ((0, Hdp - Hd), (0, 0)))
    if Cp != Dout:
        w2 = jnp.pad(w2, ((0, 0), (0, Cp - Dout)))
        b2 = jnp.pad(b2, ((0, 0), (0, Cp - Dout)))
    tr, Rp = _choose_row_tile(R)
    if Rp != R:
        x = jnp.pad(x, ((0, Rp - R), (0, 0)))
    out = pl.pallas_call(
        _mlp2_kernel,
        out_shape=jax.ShapeDtypeStruct((Rp, Cp), jnp.float32),
        grid_spec=pltpu.PrefetchScalarGridSpec(
            num_scalar_prefetch=0,
            grid=(Rp // tr,),
            in_specs=[
                pl.BlockSpec((tr, Din), lambda i: (i, 0)),
                pl.BlockSpec((Din, Hdp), lambda i: (0, 0)),
                pl.BlockSpec((1, Hdp), lambda i: (0, 0)),
                pl.BlockSpec((Hdp, Cp), lambda i: (0, 0)),
                pl.BlockSpec((1, Cp), lambda i: (0, 0)),
            ],
            out_specs=pl.BlockSpec((tr, Cp), lambda i: (i, 0)),
        ),
        compiler_params=pltpu.CompilerParams(dimension_semantics=("parallel",)),
    )(x, w1, b1, w2, b2)
    return out[:R, :Dout]


# ---------------- row-tiled matmul + bias (GRU input projection) ---------------------

def _mm_bias_kernel(x_ref, w_ref, b_ref, o_ref):
    o_ref[...] = (jnp.dot(x_ref[...], w_ref[...],
                          preferred_element_type=jnp.float32) + b_ref[...])


def matmul_bias(x, w, b):
    R, Din = x.shape
    Dout = w.shape[1]
    Cp = _round_up(Dout, 128)
    if Cp != Dout:
        w = jnp.pad(w, ((0, 0), (0, Cp - Dout)))
        b = jnp.pad(b, ((0, 0), (0, Cp - Dout)))
    tr, Rp = _choose_row_tile(R)
    if Rp != R:
        x = jnp.pad(x, ((0, Rp - R), (0, 0)))
    out = pl.pallas_call(
        _mm_bias_kernel,
        out_shape=jax.ShapeDtypeStruct((Rp, Cp), jnp.float32),
        grid_spec=pltpu.PrefetchScalarGridSpec(
            num_scalar_prefetch=0,
            grid=(Rp // tr,),
            in_specs=[
                pl.BlockSpec((tr, Din), lambda i: (i, 0)),
                pl.BlockSpec((Din, Cp), lambda i: (0, 0)),
                pl.BlockSpec((1, Cp), lambda i: (0, 0)),
            ],
            out_specs=pl.BlockSpec((tr, Cp), lambda i: (i, 0)),
        ),
        compiler_params=pltpu.CompilerParams(dimension_semantics=("parallel",)),
    )(x, w, b)
    return out[:R, :Dout]


# ---------------- GRU layer: time-chunked recurrence, hidden state in VMEM -----------

def _gru_layer_kernel(hp, tt, xg_ref, h0_ref, whh_ref, bhh_ref, out_ref, h_scr):
    # grid = (batch_tiles, time_chunks); time is the inner (sequential/"arbitrary") axis.
    @pl.when(pl.program_id(1) == 0)
    def _():
        h_scr[...] = h0_ref[...]

    # Fully-unrolled chunk of tt timesteps (tt is small & static): amortizes the per-grid-step
    # pipeline overhead and keeps the [B,Hp]@[Hp,3Hp] recurrent matmul per step on the MXU.
    for j in range(tt):
        h = h_scr[...]
        hg = (jnp.dot(h, whh_ref[...], preferred_element_type=jnp.float32)
              + bhh_ref[...])
        xg = xg_ref[j]                                  # [B, 3Hp] precomputed x@Wih^T + bih
        r = jax.nn.sigmoid(xg[:, :hp] + hg[:, :hp])
        u = jax.nn.sigmoid(xg[:, hp:2 * hp] + hg[:, hp:2 * hp])
        n = jnp.tanh(xg[:, 2 * hp:] + r * hg[:, 2 * hp:])
        h_new = (1.0 - u) * n + u * h
        h_scr[...] = h_new
        out_ref[j] = h_new


def gru_layer(xg_tbh, h0, whh, bhh, *, time_tile):
    """One GRU layer, time-major. xg_tbh: [Tp, B, 3Hp] precomputed gates; h0: [B, Hp]."""
    Tp, B, H3p = xg_tbh.shape
    Hp = H3p // 3
    # Optional batch-parallel axis (v7x: 2 TensorCores). Batch tiles must be multiples of 8.
    if B >= 16 and B % 16 == 0:
        nb, bt = 2, B // 2
    else:
        nb, bt = 1, B
    kernel = functools.partial(_gru_layer_kernel, Hp, time_tile)
    return pl.pallas_call(
        kernel,
        out_shape=jax.ShapeDtypeStruct((Tp, B, Hp), jnp.float32),
        grid_spec=pltpu.PrefetchScalarGridSpec(
            num_scalar_prefetch=0,
            grid=(nb, Tp // time_tile),
            in_specs=[
                pl.BlockSpec((time_tile, bt, H3p), lambda b, c: (c, b, 0)),
                pl.BlockSpec((bt, Hp), lambda b, c: (b, 0)),
                pl.BlockSpec((Hp, H3p), lambda b, c: (0, 0)),
                pl.BlockSpec((1, H3p), lambda b, c: (0, 0)),
            ],
            out_specs=pl.BlockSpec((time_tile, bt, Hp), lambda b, c: (c, b, 0)),
            scratch_shapes=[pltpu.VMEM((bt, Hp), jnp.float32)],
        ),
        compiler_params=pltpu.CompilerParams(
            dimension_semantics=("parallel", "arbitrary")),   # time axis is sequential
    )(xg_tbh, h0, whh, bhh)


# ---------------- fused output head: concat + Linear->ReLU->Linear + pad mask --------

def _out_head_kernel(pad_val, x_ref, n_ref, z_ref, v_ref,
                     w1x_ref, w1n_ref, w1z_ref, b1_ref, w2_ref, b2_ref, o_ref):
    h = jnp.dot(x_ref[...], w1x_ref[...], preferred_element_type=jnp.float32)
    h = h + jnp.dot(n_ref[...], w1n_ref[...], preferred_element_type=jnp.float32)
    h = h + jnp.dot(z_ref[...], w1z_ref[...], preferred_element_type=jnp.float32)
    h = jnp.maximum(h + b1_ref[...], 0.0)
    y = jnp.dot(h, w2_ref[...], preferred_element_type=jnp.float32) + b2_ref[...]
    o_ref[...] = jnp.where(v_ref[...] > 0.5, y, pad_val)


def out_head(x_flat, n_flat, zi_flat, valid_flat, w1, b1, w2, b2, *, h_orig, pad_val):
    """Fused cat([x, noise, zi]) @ W1 -> ReLU -> W2, with pad_val masking, row-tiled."""
    R, Hp = x_flat.shape
    E = n_flat.shape[1]
    Zc = zi_flat.shape[1]
    Hd, F = w1.shape[1], w2.shape[1]
    Hdp = _round_up(Hd, 128)
    Fp = _round_up(F, 128)

    # Split W1 by concat blocks (cat order in the module: [gru_out, noise, zi]).
    w1x = jnp.pad(w1[:h_orig], ((0, Hp - h_orig), (0, Hdp - Hd)))
    w1n = jnp.pad(w1[h_orig:h_orig + E], ((0, 0), (0, Hdp - Hd)))
    w1z = jnp.pad(w1[h_orig + E:], ((0, 0), (0, Hdp - Hd)))
    b1p = jnp.pad(b1, ((0, 0), (0, Hdp - Hd)))
    w2p = jnp.pad(w2, ((0, Hdp - Hd), (0, Fp - F)))
    b2p = jnp.pad(b2, ((0, 0), (0, Fp - F)))

    tr, Rp = _choose_row_tile(R)
    if Rp != R:
        pad = ((0, Rp - R), (0, 0))
        x_flat = jnp.pad(x_flat, pad)
        n_flat = jnp.pad(n_flat, pad)
        zi_flat = jnp.pad(zi_flat, pad)
        valid_flat = jnp.pad(valid_flat, pad)

    kernel = functools.partial(_out_head_kernel, pad_val)
    out = pl.pallas_call(
        kernel,
        out_shape=jax.ShapeDtypeStruct((Rp, Fp), jnp.float32),
        grid_spec=pltpu.PrefetchScalarGridSpec(
            num_scalar_prefetch=0,
            grid=(Rp // tr,),
            in_specs=[
                pl.BlockSpec((tr, Hp), lambda i: (i, 0)),
                pl.BlockSpec((tr, E), lambda i: (i, 0)),
                pl.BlockSpec((tr, Zc), lambda i: (i, 0)),
                pl.BlockSpec((tr, 1), lambda i: (i, 0)),
                pl.BlockSpec((Hp, Hdp), lambda i: (0, 0)),
                pl.BlockSpec((E, Hdp), lambda i: (0, 0)),
                pl.BlockSpec((Zc, Hdp), lambda i: (0, 0)),
                pl.BlockSpec((1, Hdp), lambda i: (0, 0)),
                pl.BlockSpec((Hdp, Fp), lambda i: (0, 0)),
                pl.BlockSpec((1, Fp), lambda i: (0, 0)),
            ],
            out_specs=pl.BlockSpec((tr, Fp), lambda i: (i, 0)),
        ),
        compiler_params=pltpu.CompilerParams(dimension_semantics=("parallel",)),
    )(x_flat, n_flat, zi_flat, valid_flat, w1x, w1n, w1z, b1p, w2p, b2p)
    return out[:R, :F]


# ---------------- GRU weight padding (per-gate lane padding, zero-inert) -------------

def _pad_gate_cols(w, H, Hp):
    rows = w.shape[0]
    w3 = jnp.pad(w.reshape(rows, 3, H), ((0, 0), (0, 0), (0, Hp - H)))
    return w3.reshape(rows, 3 * Hp)


def _pad_gru_params(p, l, H, Hp, in_rows):
    wih = _pad_gate_cols(p[f"gru_wih_{l}"], H, Hp)
    if wih.shape[0] != in_rows:                       # layers > 0 consume Hp-wide input
        wih = jnp.pad(wih, ((0, in_rows - wih.shape[0]), (0, 0)))
    whh = jnp.pad(_pad_gate_cols(p[f"gru_whh_{l}"], H, Hp), ((0, Hp - H), (0, 0)))
    bih = _pad_gate_cols(p[f"gru_bih_{l}"], H, Hp)
    bhh = _pad_gate_cols(p[f"gru_bhh_{l}"], H, Hp)
    return wih, whh, bih, bhh


# ---------------- full Generator forward ---------------------------------------------

def generator_forward(z, s, noise, T_in, params, *, layers, nhidden, pad_val):
    """Pallas forward for Generator (Z_dim > 0 path).

    z: [B, Z_dim]; s: [B, >=T, S_dim] or None; noise: [B, T, eta_dim] (rsample); T_in: [B] int32.
    """
    p = params
    B, Zd = z.shape
    T = noise.shape[1]
    H = nhidden
    Hp = _round_up(H, 128)

    # Time chunk for the recurrence; pad T up to a multiple of TT (extra steps are discarded).
    TT = T if T <= 16 else 16
    Tp = _round_up(T, TT)

    # init_hidden = emb_hidden(z).reshape(B, layers, H).permute(1, 0, 2), zero-padded to Hp.
    init_flat = mlp2(z, p["emb_w1"], p["emb_b1"], p["emb_w2"], p["emb_b2"])
    init_h = init_flat.reshape(B, layers, H).transpose(1, 0, 2)
    init_h = jnp.pad(init_h, ((0, 0), (0, 0), (0, Hp - H)))          # [layers, B, Hp]

    # Time-major zi [Tp, B, Zcat] (z broadcast over time; s transposed once, small).
    zi_parts = [jnp.broadcast_to(z[None, :, :], (T, B, Zd))]
    if s is not None and s.shape[-1] > 0:
        zi_parts.append(jnp.transpose(s[:, :T], (1, 0, 2)))
    zi = jnp.concatenate(zi_parts, axis=-1)
    if Tp != T:
        zi = jnp.pad(zi, ((0, Tp - T), (0, 0), (0, 0)))
    Zc = zi.shape[-1]

    # Multi-layer GRU, time-major throughout (no per-layer transposes):
    # batched input projection [Tp*B, 3Hp] + time-chunked recurrence per layer.
    x = zi.reshape(Tp * B, Zc)
    for l in range(layers):
        wih, whh, bih, bhh = _pad_gru_params(p, l, H, Hp, in_rows=x.shape[1])
        xg = matmul_bias(x, wih, bih).reshape(Tp, B, 3 * Hp)
        out_tbh = gru_layer(xg, init_h[l], whh, bhh, time_tile=TT)   # [Tp, B, Hp]
        x = out_tbh.reshape(Tp * B, Hp)

    # Fused output head: concat([gru_out, noise, zi]) -> MLP -> pad_val mask, all in-kernel.
    noise_tm = jnp.transpose(noise, (1, 0, 2))                       # [T, B, eta]
    if Tp != T:
        noise_tm = jnp.pad(noise_tm, ((0, Tp - T), (0, 0), (0, 0)))
    n_flat = noise_tm.reshape(Tp * B, -1)
    zi_flat = zi.reshape(Tp * B, Zc)
    valid = (jnp.arange(Tp)[:, None] < T_in[None, :]).astype(jnp.float32)   # [Tp, B]
    valid_flat = valid.reshape(Tp * B, 1)

    y = out_head(x, n_flat, zi_flat, valid_flat,
                 p["out_w1"], p["out_b1"], p["out_w2"], p["out_b2"],
                 h_orig=H, pad_val=pad_val)                          # [Tp*B, F]
    F = p["out_w2"].shape[1]
    return y.reshape(Tp, B, F)[:T].transpose(1, 0, 2)                # [B, T, F]


# ---------------- params & pure-JAX reference ----------------------------------------

def init_params(key, Z_dim, S_dim, eta_dim, F_dim, nhidden, layers):
    """PyTorch-style U(-1/sqrt(fan_in), 1/sqrt(fan_in)) init; weights stored [in, out]."""
    Zcat = Z_dim + S_dim
    keys = iter(jax.random.split(key, 64))

    def uniform(shape, bound):
        return jax.random.uniform(next(keys), shape, jnp.float32, -bound, bound)

    def linear(fan_in, fan_out):
        b = 1.0 / (fan_in ** 0.5)
        return uniform((fan_in, fan_out), b), uniform((1, fan_out), b)

    p = {}
    p["emb_w1"], p["emb_b1"] = linear(Z_dim, nhidden)
    p["emb_w2"], p["emb_b2"] = linear(nhidden, nhidden * layers)
    for l in range(layers):
        in_l = Zcat if l == 0 else nhidden
        bound = 1.0 / (nhidden ** 0.5)
        p[f"gru_wih_{l}"] = uniform((in_l, 3 * nhidden), bound)
        p[f"gru_whh_{l}"] = uniform((nhidden, 3 * nhidden), bound)
        p[f"gru_bih_{l}"] = uniform((1, 3 * nhidden), bound)
        p[f"gru_bhh_{l}"] = uniform((1, 3 * nhidden), bound)
    p["out_w1"], p["out_b1"] = linear(nhidden + eta_dim + Zcat, nhidden)
    p["out_w2"], p["out_b2"] = linear(nhidden, F_dim)
    return p


def reference_forward(z, s, noise, T_in, params, *, layers, nhidden, pad_val):
    p = params
    B = z.shape[0]
    T = noise.shape[1]
    H = nhidden
    init = jnp.maximum(z @ p["emb_w1"] + p["emb_b1"], 0.0) @ p["emb_w2"] + p["emb_b2"]
    init = init.reshape(B, layers, H).transpose(1, 0, 2)
    zi = jnp.tile(z[:, None, :], (1, T, 1))
    if s is not None and s.shape[-1] > 0:
        zi = jnp.concatenate([zi, s[:, :T]], axis=-1)
    x = zi
    for l in range(layers):
        wih, whh = p[f"gru_wih_{l}"], p[f"gru_whh_{l}"]
        bih, bhh = p[f"gru_bih_{l}"], p[f"gru_bhh_{l}"]
        h = init[l]
        outs = []
        for t in range(T):
            xg = x[:, t] @ wih + bih
            hg = h @ whh + bhh
            r = jax.nn.sigmoid(xg[:, :H] + hg[:, :H])
            u = jax.nn.sigmoid(xg[:, H:2 * H] + hg[:, H:2 * H])
            n = jnp.tanh(xg[:, 2 * H:] + r * hg[:, 2 * H:])
            h = (1.0 - u) * n + u * h
            outs.append(h)
        x = jnp.stack(outs, axis=1)
    cat = jnp.concatenate([x, noise, zi], axis=-1)
    y = jnp.maximum(cat @ p["out_w1"] + p["out_b1"], 0.0) @ p["out_w2"] + p["out_b2"]
    valid = jnp.arange(T)[None, :] < T_in[:, None]
    return jnp.where(valid[:, :, None], y, pad_val)


if __name__ == "__main__":
    key = jax.random.PRNGKey(0)
    B, Z_DIM, S_DIM, ETA_DIM, F_DIM = 2, 4, 3, 2, 5
    NHIDDEN, LAYERS = 32, 2
    PAD_VAL = -1.0
    T_in_list = [8, 6]
    seqlen = max(T_in_list)
    T_in = jnp.array(T_in_list, dtype=jnp.int32)

    kz, ks, kn, kp = jax.random.split(key, 4)
    z = jax.random.normal(kz, (B, Z_DIM), jnp.float32)
    s = jax.random.normal(ks, (B, seqlen, S_DIM), jnp.float32)
    noise = jax.random.normal(kn, (B, seqlen, ETA_DIM), jnp.float32)   # rsample noise
    params = init_params(kp, Z_DIM, S_DIM, ETA_DIM, F_DIM, NHIDDEN, LAYERS)

    out = generator_forward(z, s, noise, T_in, params,
                            layers=LAYERS, nhidden=NHIDDEN, pad_val=PAD_VAL)
    out = jax.block_until_ready(out)

    ref = reference_forward(z, s, noise, T_in, params,
                            layers=LAYERS, nhidden=NHIDDEN, pad_val=PAD_VAL)
    assert out.shape == (B, seqlen, F_DIM)
    assert jnp.allclose(out, ref, atol=2e-3, rtol=2e-3), "mismatch vs reference"

    print("KERNEL_OK")
</pallas_src>

<mosaic_0001>
module attributes {stable_mosaic.version = 11 : i64} {
  func.func @_mlp2_kernel(%arg0: i32, %arg1: memref<8x4xf32, #tpu.memory_space<vmem>>, %arg2: memref<4x128xf32, #tpu.memory_space<vmem>>, %arg3: memref<1x128xf32, #tpu.memory_space<vmem>>, %arg4: memref<128x128xf32, #tpu.memory_space<vmem>>, %arg5: memref<1x128xf32, #tpu.memory_space<vmem>>, %arg6: memref<8x128xf32, #tpu.memory_space<vmem>>) attributes {dimension_semantics = [#tpu.dimension_semantics<parallel>], iteration_bounds = array<i64: 1>, scalar_prefetch = 0 : i64, scratch_operands = 0 : i64, tpu.core_type = #tpu.core_type<tc>, window_params = [{transform_indices = @transform_0, window_bounds = array<i64: 8, 4>}, {pipeline_mode = #tpu.pipeline_mode<synchronous>, transform_indices = @transform_1, window_bounds = array<i64: 4, 128>}, {pipeline_mode = #tpu.pipeline_mode<synchronous>, transform_indices = @transform_2, window_bounds = array<i64: 1, 128>}, {pipeline_mode = #tpu.pipeline_mode<synchronous>, transform_indices = @transform_3, window_bounds = array<i64: 128, 128>}, {pipeline_mode = #tpu.pipeline_mode<synchronous>, transform_indices = @transform_4, window_bounds = array<i64: 1, 128>}, {transform_indices = @transform_5, window_bounds = array<i64: 8, 128>}]} {
    %c0 = arith.constant 0 : index
    %c0_0 = arith.constant 0 : index
    %0 = vector.load %arg1[%c0, %c0_0] : memref<8x4xf32, #tpu.memory_space<vmem>>, vector<8x4xf32>
    %c0_1 = arith.constant 0 : index
    %c0_2 = arith.constant 0 : index
    %1 = vector.load %arg2[%c0_1, %c0_2] : memref<4x128xf32, #tpu.memory_space<vmem>>, vector<4x128xf32>
    %cst = arith.constant dense<0.000000e+00> : vector<8x128xf32>
    %2 = tpu.matmul %0, %1, %cst {dimension_numbers = #tpu.dot_dimension_numbers<[1], [0], [0], [1], [0, 0, 1, 1], [], []>} : vector<8x4xf32>, vector<4x128xf32>, vector<8x128xf32> -> vector<8x128xf32>
    %c0_3 = arith.constant 0 : index
    %c0_4 = arith.constant 0 : index
    %3 = vector.load %arg3[%c0_3, %c0_4] : memref<1x128xf32, #tpu.memory_space<vmem>>, vector<1x128xf32>
    %4 = vector.broadcast %3 : vector<1x128xf32> to vector<8x128xf32>
    %5 = arith.addf %2, %4 : vector<8x128xf32>
    %cst_5 = arith.constant 0.000000e+00 : f32
    %6 = vector.broadcast %cst_5 : f32 to vector<8x128xf32>
    %7 = arith.maximumf %5, %6 : vector<8x128xf32>
    %c0_6 = arith.constant 0 : index
    %c0_7 = arith.constant 0 : index
    %8 = vector.load %arg4[%c0_6, %c0_7] : memref<128x128xf32, #tpu.memory_space<vmem>>, vector<128x128xf32>
    %cst_8 = arith.constant dense<0.000000e+00> : vector<8x128xf32>
    %9 = tpu.matmul %7, %8, %cst_8 {dimension_numbers = #tpu.dot_dimension_numbers<[1], [0], [0], [1], [0, 0, 1, 1], [], []>} : vector<8x128xf32>, vector<128x128xf32>, vector<8x128xf32> -> vector<8x128xf32>
    %c0_9 = arith.constant 0 : index
    %c0_10 = arith.constant 0 : index
    %10 = vector.load %arg5[%c0_9, %c0_10] : memref<1x128xf32, #tpu.memory_space<vmem>>, vector<1x128xf32>
    %11 = vector.broadcast %10 : vector<1x128xf32> to vector<8x128xf32>
    %12 = arith.addf %9, %11 : vector<8x128xf32>
    %c0_11 = arith.constant 0 : index
    %c0_12 = arith.constant 0 : index
    %13 = vector.load %arg6[%c0_11, %c0_12] : memref<8x128xf32, #tpu.memory_space<vmem>>, vector<8x128xf32>
    tpu.vector_store %arg6[%c0_11, %c0_12], %12 {strides = array<i32>} : memref<8x128xf32, #tpu.memory_space<vmem>>, vector<8x128xf32>,
    return
  }
  func.func @transform_0(%arg0: i32) -> (i32, i32) {
    %c0_i32 = arith.constant 0 : i32
    %c0_i32_0 = arith.constant 0 : i32
    return %arg0, %c0_i32 : i32, i32
  }
  func.func @transform_1(%arg0: i32) -> (i32, i32) {
    %c0_i32 = arith.constant 0 : i32
    %c0_i32_0 = arith.constant 0 : i32
    %c0_i32_1 = arith.constant 0 : i32
    return %c0_i32, %c0_i32_0 : i32, i32
  }
  func.func @transform_2(%arg0: i32) -> (i32, i32) {
    %c0_i32 = arith.constant 0 : i32
    %c0_i32_0 = arith.constant 0 : i32
    %c0_i32_1 = arith.constant 0 : i32
    return %c0_i32, %c0_i32_0 : i32, i32
  }
  func.func @transform_3(%arg0: i32) -> (i32, i32) {
    %c0_i32 = arith.constant 0 : i32
    %c0_i32_0 = arith.constant 0 : i32
    %c0_i32_1 = arith.constant 0 : i32
    return %c0_i32, %c0_i32_0 : i32, i32
  }
  func.func @transform_4(%arg0: i32) -> (i32, i32) {
    %c0_i32 = arith.constant 0 : i32
    %c0_i32_0 = arith.constant 0 : i32
    %c0_i32_1 = arith.constant 0 : i32
    return %c0_i32, %c0_i32_0 : i32, i32
  }
  func.func @transform_5(%arg0: i32) -> (i32, i32) {
    %c0_i32 = arith.constant 0 : i32
    %c0_i32_0 = arith.constant 0 : i32
    return %arg0, %c0_i32 : i32, i32
  }
}

</mosaic_0001>

<bundles_post_ra>
// kernel: tpu_custom_call.1
= control target key start
LH: loop header
LB: loop body
LE: loop exit
PB: predicated region body
PF: predicated region fallthrough
CT: control target
= control target key end

     0   :  { %10 = vsyncpa [#allocation3], 0  ;;  %s242_s0 = inlined_call_operand.vmem [shape: f32[8,4], index: 0, kind: input, shape index: {}]   ;;  %s243_s1 = inlined_call_operand.vmem [shape: f32[4,128], index: 1, kind: input, shape index: {}]   ;;  %s244_s2 = inlined_call_operand.vmem [shape: f32[1,128], index: 2, kind: input, shape index: {}]   ;;  %s245_s3 = inlined_call_operand.hbm [shape: f32[128,128], index: 3, kind: input, shape index: {}]   ;;  %s246_s4 = inlined_call_operand.vmem [shape: f32[1,128], index: 4, kind: input, shape index: {}]   ;;  %s247_s5 = inlined_call_operand.hbm [shape: f32[8,128], index: 5, kind: output, shape index: {}]  }
   0x1   :  { %11 = vsyncpa [#allocation4], 0  ;;  %s22_s20 = sshll.u32 %s245_s3, 4  ;;  %s190_s21 = smov [#allocation2]   ;;  %s23_s20 = int_to_ptr.hbm [resolvable:$true] %s22_s20 }
   0x2   :  { %s24_s22 = sshll.u32 %s190_s21, 4  ;;  %s191_s23 = smov 128   ;;  %s25_s22 = int_to_ptr.vmem [resolvable:$true] %s24_s22 }
   0x3   :  { %s192_s24 = smov 8  }
   0x4   :  { %30 = dma.hbm_to_vmem [thread:$0]  %s23_s20, 2048, %s25_s22, [#allocation3], %s191_s23, %s191_s23, %s192_s24  }
   0x5   :  { %186 = dma.done.wait [#allocation3], 2048  }
   0x6   :  { %187 = vsyncadd [#allocation3], 4294965248  ;;  %vm47_vm0 = vcmask 1043456   ;;  %vm43_vm1 = vcmask 31744   ;;  %v38_v0 = vld [vmem:[%s243_s1] sm:$0xf] }
   0x7   :  { %v37_v1 = vld [vmem:[%s242_s0] sm:$0xff]  ;;  %v87_v2 = vld [vmem:[#allocation2 + $0x78] sm:$0xff]  ;;  %130 = vmatpush.msk.msra.mxu0 %vm47_vm0, %v38_v0  ;;  %v86_v3 = vld [vmem:[#allocation2 + $0x70] sm:$0xff]  ;;  %s193_s30 = smov [#allocation5]   ;;  %s120_s9 = sshll.u32 %s247_s5, 4  ;;  %s121_s9 = int_to_ptr.hbm [resolvable:$true] %s120_s9 }
   0x8   :  { %92 = vmatpush.msra.mxu1 %v87_v2  ;;  %131 = vmatmul.msk.f32.vlgmr.msra.gmra.mxu0 %vm43_vm1, %v37_v1  ;;  %v85_v4 = vld [vmem:[#allocation2 + $0x68] sm:$0xff]  ;;  %v84_v5 = vld [vmem:[#allocation2 + $0x60] sm:$0xff]  ;;  %v83_v6 = vld [vmem:[#allocation2 + $0x58] sm:$0xff]  ;;  %s118_s6 = sshll.u32 %s193_s30, 4  ;;  %s119_s6 = int_to_ptr.vmem [resolvable:$true] %s118_s6 }
   0x9   :  { %v82_v7 = vld [vmem:[#allocation2 + $0x50] sm:$0xff]  ;;  %v81_v8 = vld [vmem:[#allocation2 + $0x48] sm:$0xff]  ;;  %v80_v9 = vld [vmem:[#allocation2 + $0x40] sm:$0xff] }
   0xa   :  { %93 = vmatpush.msra.mxu1 %v86_v3  ;;  %v79_v10 = vld [vmem:[#allocation2 + $0x38] sm:$0xff]  ;;  %v78_v11 = vld [vmem:[#allocation2 + $0x30] sm:$0xff]  ;;  %v77_v12 = vld [vmem:[#allocation2 + $0x28] sm:$0xff] }
   0xb   :  { %v76_v13 = vld [vmem:[#allocation2 + $0x20] sm:$0xff]  ;;  %v75_v14 = vld [vmem:[#allocation2 + $0x18] sm:$0xff]  ;;  %v74_v15 = vld [vmem:[#allocation2 + $0x10] sm:$0xff] }
   0xc   :  { %94 = vmatpush.msra.mxu1 %v85_v4  ;;  %v73_v16 = vld [vmem:[#allocation2 + $0x8] sm:$0xff]  ;;  %v72_v17 = vld [vmem:[#allocation2] sm:$0xff] }
   0xd   :  { %v136_v18 = vld [vmem:[%s244_s2] ss:$0 sm:$0xff] }
   0xe   :  { %95 = vmatpush.msra.mxu1 %v84_v5  ;;  %v137_v22 = vld [vmem:[%s246_s4] ss:$0 sm:$0xff] }
  0x10   :  { %96 = vmatpush.msra.mxu1 %v83_v6 }
  0x12   :  { %97 = vmatpush.msra.mxu1 %v82_v7 }
  0x14   :  { %98 = vmatpush.msra.mxu1 %v81_v8 }
  0x16   :  { %99 = vmatpush.msra.mxu1 %v80_v9 }
  0x18   :  { %100 = vmatpush.msra.mxu1 %v79_v10 }
  0x1a   :  { %101 = vmatpush.msra.mxu1 %v78_v11 }
  0x1c   :  { %102 = vmatpush.msra.mxu1 %v77_v12 }
  0x1e   :  { %103 = vmatpush.msra.mxu1 %v76_v13 }
  0x20   :  { %104 = vmatpush.msra.mxu1 %v75_v14 }
  0x22   :  { %105 = vmatpush.msra.mxu1 %v74_v15 }
  0x24   :  { %106 = vmatpush.msra.mxu1 %v73_v16 }
  0x26   :  { %107 = vmatpush.msra.mxu1 %v72_v17 }
  0x85   :  { %v68_v19 = vpop.f32.mrf.mxu0 }
  0x86   :  { %v69_v20 = vadd.f32 %v136_v18, %v68_v19 }
  0x88   :  { %v71_v21 = vmax.f32 %v69_v20, 0.0 }
  0x8a   :  { %108 = vmatmul.f32.vlgmr.msra.gmra.mxu1 %v71_v21 }
 0x107   :  { %v109_v23 = vpop.f32.mrf.mxu1 }
 0x108   :  { %v110_v24 = vadd.f32 %v137_v22, %v109_v23 }
 0x10a   :  { %112 = vst [vmem:[#allocation5] sm:$0xff] %v110_v24 }
 0x10b   :  { %123 = dma.vmem_to_hbm [thread:$0]  %s119_s6, 128, %s121_s9, [#allocation4]  }
 0x10c   :  { %188 = dma.done.wait [#allocation4], 128  }
 0x10d   :  { %189 = vsyncadd [#allocation4], 4294967168 }
 0x10e   :  { %128 = vsyncpa [#allocation3], 1 }
 0x10f   :  { %129 = vsyncpa [#allocation4], 1 }

</bundles_post_ra>
